<compile_context>
chip_gen: v6e
topology: v6e:2x2x1
jax: 0.10.0
libtpu: 0.0.40
codegen_flags: <defaults>
</compile_context>

<pallas_src>
import functools

import jax
import jax.numpy as jnp
from jax.experimental import pallas as pl
from jax.experimental.pallas import tpu as pltpu


def _disc_loss_kernel(weight_ref, x_ref, w1_ref, b1_ref, w2_ref, b2_ref,
                      out_ref, acc_ref, *, batch):
    """One grid step of the discriminator loss.

    weight_ref : (1, 1)        SMEM, runtime disc_loss_weight
    x_ref      : (M_pad, tk)   bf16, stacked [fake; real] image block (K tile)
    w1_ref     : (tk, H)       bf16, layer-1 weight K tile
    b1_ref     : (1, H)        f32
    w2_ref     : (H, O)        bf16
    b2_ref     : (1, O)        f32
    out_ref    : (1, 1)        SMEM scalar loss
    acc_ref    : (M_pad, H)    VMEM f32 accumulator (layer-1 pre-activation)
    """
    k = pl.program_id(0)

    @pl.when(k == 0)
    def _init():
        acc_ref[...] = jnp.zeros_like(acc_ref)

    # Partial first-layer matmul: bf16 operands, f32 accumulation on the MXU.
    acc_ref[...] += jnp.dot(x_ref[...], w1_ref[...],
                            preferred_element_type=jnp.float32)

    @pl.when(k == pl.num_programs(0) - 1)
    def _finalize():
        # Epilogue in f32 (VPU): bias + LeakyReLU(0.2).
        h = acc_ref[...] + b1_ref[...]
        h = jnp.where(h > 0, h, 0.2 * h)
        # Second layer: bf16 operands to the MXU, f32 accumulation.
        s = jnp.dot(h.astype(jnp.bfloat16), w2_ref[...],
                    preferred_element_type=jnp.float32) + b2_ref[...]

        # Rows [0, B) are fake scores (target 0), rows [B, 2B) real (target 1);
        # padded rows (>= 2B) are masked out of the reduction.
        row = jax.lax.broadcasted_iota(jnp.int32, s.shape, 0)
        target = jnp.where(row < batch, 0.0, 1.0)
        valid = row < 2 * batch
        d = jnp.where(valid, s - target, 0.0)

        n = float(batch * s.shape[1])                  # elements per MSE (B*O)
        # 0.5*(sum_fake + sum_real)/n == 0.5*(mse_fake + mse_real)
        loss = 0.5 * jnp.sum(d * d) / n
        out_ref[0, 0] = weight_ref[0, 0] * loss


def make_discriminator_params(key, in_features, hidden, out_features):
    """Deterministic synthetic discriminator parameters."""
    k1, k2, k3, k4 = jax.random.split(key, 4)
    w1 = jax.random.normal(k1, (in_features, hidden), jnp.float32) * 0.02
    b1 = jax.random.normal(k2, (1, hidden), jnp.float32) * 0.01
    w2 = jax.random.normal(k3, (hidden, out_features), jnp.float32) * 0.02
    b2 = jax.random.normal(k4, (1, out_features), jnp.float32) * 0.01
    return w1, b1, w2, b2


def discriminator_loss(fake_img, real_img, params, flag, disc_loss_weight=1.0):
    """JAX wrapper mirroring DiscriminatorLoss.forward."""
    w1, b1, w2, b2 = params
    b = fake_img.shape[0]
    f = w1.shape[0]
    hidden = w1.shape[1]
    out_f = w2.shape[1]

    # NCHW -> (B, C*H*W); stack [fake; real] so each layer is ONE matmul.
    fake_flat = fake_img.reshape(b, -1)
    real_flat = real_img.reshape(b, -1)
    x = jnp.concatenate([fake_flat, real_flat], axis=0).astype(jnp.bfloat16)

    # Pad M = 2B up to a full 8-sublane vreg.
    m = 2 * b
    m_pad = max(8, ((m + 7) // 8) * 8)
    if m_pad != m:
        x = jnp.pad(x, ((0, m_pad - m), (0, 0)))

    # Tile the feature (K) axis so W1 never needs to be VMEM-resident whole.
    tk = min(512, ((f + 127) // 128) * 128)
    f_pad = ((f + tk - 1) // tk) * tk
    if f_pad != f:
        x = jnp.pad(x, ((0, 0), (0, f_pad - f)))
        w1 = jnp.pad(w1, ((0, f_pad - f), (0, 0)))
    num_k = f_pad // tk

    w1_bf = w1.astype(jnp.bfloat16)
    w2_bf = w2.astype(jnp.bfloat16)
    weight_arr = jnp.full((1, 1), disc_loss_weight, jnp.float32)

    kernel = functools.partial(_disc_loss_kernel, batch=b)

    flops = 2 * m_pad * f_pad * hidden + 2 * m_pad * hidden * out_f
    bytes_accessed = int(x.size * 2 + w1_bf.size * 2 + b1.size * 4
                         + w2_bf.size * 2 + b2.size * 4 + 4 + 4)

    loss = pl.pallas_call(
        kernel,
        out_shape=jax.ShapeDtypeStruct((1, 1), jnp.float32),
        grid=(num_k,),
        in_specs=[
            pl.BlockSpec(memory_space=pltpu.MemorySpace.SMEM),       # weight
            pl.BlockSpec((m_pad, tk), lambda k: (0, k)),             # x (bf16)
            pl.BlockSpec((tk, hidden), lambda k: (k, 0)),            # W1 (bf16)
            pl.BlockSpec((1, hidden), lambda k: (0, 0)),             # b1
            pl.BlockSpec((hidden, out_f), lambda k: (0, 0)),         # W2 (bf16)
            pl.BlockSpec((1, out_f), lambda k: (0, 0)),              # b2
        ],
        out_specs=pl.BlockSpec(memory_space=pltpu.MemorySpace.SMEM),
        scratch_shapes=[pltpu.VMEM((m_pad, hidden), jnp.float32)],
        compiler_params=pltpu.CompilerParams(
            dimension_semantics=("arbitrary",)),
        cost_estimate=pl.CostEstimate(flops=flops, transcendentals=0,
                                      bytes_accessed=bytes_accessed),
    )(weight_arr, x, w1_bf, b1, w2_bf, b2)

    return {f"disc_loss_{flag}": loss[0, 0]}


if __name__ == "__main__":
    key = jax.random.PRNGKey(0)
    k_fake, k_real, k_params = jax.random.split(key, 3)

    # Small shapes consistent with an image discriminator input.
    B, C, H, W = 2, 4, 16, 16
    HIDDEN, OUT = 128, 128  # patch-style score map of 128 values per sample

    fake_img = jax.random.normal(k_fake, (B, C, H, W), jnp.float32)
    real_img = jax.random.normal(k_real, (B, C, H, W), jnp.float32)
    params = make_discriminator_params(k_params, C * H * W, HIDDEN, OUT)

    out = discriminator_loss(fake_img, real_img, params, flag="train",
                             disc_loss_weight=1.0)
    jax.block_until_ready(out)

    # Reference in plain JAX (same bf16-operand / f32-accumulate math).
    def ref_loss(fake, real, prm, wgt):
        w1, b1, w2, b2 = prm
        x = jnp.concatenate([fake.reshape(fake.shape[0], -1),
                             real.reshape(real.shape[0], -1)], axis=0)
        h = jnp.dot(x.astype(jnp.bfloat16), w1.astype(jnp.bfloat16),
                    preferred_element_type=jnp.float32) + b1
        h = jnp.where(h > 0, h, 0.2 * h)
        s = jnp.dot(h.astype(jnp.bfloat16), w2.astype(jnp.bfloat16),
                    preferred_element_type=jnp.float32) + b2
        sf, sr = s[:fake.shape[0]], s[fake.shape[0]:]
        return wgt * 0.5 * (jnp.mean(sf ** 2) + jnp.mean((sr - 1.0) ** 2))

    ref = ref_loss(fake_img, real_img, params, 1.0)
    got = out["disc_loss_train"]
    assert jnp.allclose(got, ref, rtol=1e-4, atol=1e-5), (got, ref)

    print("KERNEL_OK")
</pallas_src>

<mosaic_0001>
module attributes {stable_mosaic.version = 11 : i64} {
  func.func @_disc_loss_kernel(%arg0: i32, %arg1: memref<1x1xf32, #tpu.memory_space<smem>>, %arg2: memref<8x512xbf16, #tpu.memory_space<vmem>>, %arg3: memref<512x128xbf16, #tpu.memory_space<vmem>>, %arg4: memref<1x128xf32, #tpu.memory_space<vmem>>, %arg5: memref<128x128xbf16, #tpu.memory_space<vmem>>, %arg6: memref<1x128xf32, #tpu.memory_space<vmem>>, %arg7: memref<1x1xf32, #tpu.memory_space<smem>>, %arg8: memref<8x128xf32, #tpu.memory_space<vmem>>) attributes {dimension_semantics = [#tpu.dimension_semantics<arbitrary>], iteration_bounds = array<i64: 2>, scalar_prefetch = 0 : i64, scratch_operands = 1 : i64, tpu.core_type = #tpu.core_type<tc>, window_params = [{transform_indices = @transform_0, window_bounds = array<i64: 1, 1>}, {transform_indices = @transform_1, window_bounds = array<i64: 8, 512>}, {transform_indices = @transform_2, window_bounds = array<i64: 512, 128>}, {pipeline_mode = #tpu.pipeline_mode<synchronous>, transform_indices = @transform_3, window_bounds = array<i64: 1, 128>}, {pipeline_mode = #tpu.pipeline_mode<synchronous>, transform_indices = @transform_4, window_bounds = array<i64: 128, 128>}, {pipeline_mode = #tpu.pipeline_mode<synchronous>, transform_indices = @transform_5, window_bounds = array<i64: 1, 128>}, {transform_indices = @transform_6, window_bounds = array<i64: 1, 1>}]} {
    %c0_i32 = arith.constant 0 : i32
    %0 = arith.cmpi eq, %arg0, %c0_i32 : i32
    %1 = arith.extui %0 : i1 to i32
    %c0_i32_0 = arith.constant 0 : i32
    %2 = arith.cmpi ne, %1, %c0_i32_0 : i32
    scf.if %2 {
      %cst_9 = arith.constant 0.000000e+00 : f32
      %12 = vector.broadcast %cst_9 : f32 to vector<8x128xf32>
      %c0_10 = arith.constant 0 : index
      %c0_11 = arith.constant 0 : index
      %13 = vector.load %arg8[%c0_10, %c0_11] : memref<8x128xf32, #tpu.memory_space<vmem>>, vector<8x128xf32>
      tpu.vector_store %arg8[%c0_10, %c0_11], %12 {strides = array<i32>} : memref<8x128xf32, #tpu.memory_space<vmem>>, vector<8x128xf32>,
    } else {
    }
    %c0 = arith.constant 0 : index
    %c0_1 = arith.constant 0 : index
    %3 = vector.load %arg8[%c0, %c0_1] : memref<8x128xf32, #tpu.memory_space<vmem>>, vector<8x128xf32>
    %c0_2 = arith.constant 0 : index
    %c0_3 = arith.constant 0 : index
    %4 = vector.load %arg2[%c0_2, %c0_3] : memref<8x512xbf16, #tpu.memory_space<vmem>>, vector<8x512xbf16>
    %c0_4 = arith.constant 0 : index
    %c0_5 = arith.constant 0 : index
    %5 = vector.load %arg3[%c0_4, %c0_5] : memref<512x128xbf16, #tpu.memory_space<vmem>>, vector<512x128xbf16>
    %cst = arith.constant dense<0.000000e+00> : vector<8x128xf32>
    %6 = tpu.matmul %4, %5, %cst {dimension_numbers = #tpu.dot_dimension_numbers<[1], [0], [0], [1], [0, 0, 1, 1], [], []>} : vector<8x512xbf16>, vector<512x128xbf16>, vector<8x128xf32> -> vector<8x128xf32>
    %7 = arith.addf %3, %6 : vector<8x128xf32>
    %c0_6 = arith.constant 0 : index
    %c0_7 = arith.constant 0 : index
    %8 = vector.load %arg8[%c0_6, %c0_7] : memref<8x128xf32, #tpu.memory_space<vmem>>, vector<8x128xf32>
    tpu.vector_store %arg8[%c0_6, %c0_7], %7 {strides = array<i32>} : memref<8x128xf32, #tpu.memory_space<vmem>>, vector<8x128xf32>,
    %c1_i32 = arith.constant 1 : i32
    %9 = arith.cmpi eq, %arg0, %c1_i32 : i32
    %10 = arith.extui %9 : i1 to i32
    %c0_i32_8 = arith.constant 0 : i32
    %11 = arith.cmpi ne, %10, %c0_i32_8 : i32
    scf.if %11 {
      %c0_9 = arith.constant 0 : index
      %c0_10 = arith.constant 0 : index
      %12 = vector.load %arg8[%c0_9, %c0_10] : memref<8x128xf32, #tpu.memory_space<vmem>>, vector<8x128xf32>
      %c0_11 = arith.constant 0 : index
      %c0_12 = arith.constant 0 : index
      %13 = vector.load %arg4[%c0_11, %c0_12] : memref<1x128xf32, #tpu.memory_space<vmem>>, vector<1x128xf32>
      %14 = vector.broadcast %13 : vector<1x128xf32> to vector<8x128xf32>
      %15 = arith.addf %12, %14 : vector<8x128xf32>
      %cst_13 = arith.constant 0.000000e+00 : f32
      %16 = vector.broadcast %cst_13 : f32 to vector<8x128xf32>
      %17 = arith.cmpf ogt, %15, %16 : vector<8x128xf32>
      %cst_14 = arith.constant 2.000000e-01 : f32
      %18 = vector.broadcast %cst_14 : f32 to vector<8x128xf32>
      %19 = arith.mulf %18, %15 : vector<8x128xf32>
      %20 = arith.select %17, %15, %19 : vector<8x128xi1>, vector<8x128xf32>
      %21 = arith.truncf %20 : vector<8x128xf32> to vector<8x128xbf16>
      %c0_15 = arith.constant 0 : index
      %c0_16 = arith.constant 0 : index
      %22 = vector.load %arg5[%c0_15, %c0_16] : memref<128x128xbf16, #tpu.memory_space<vmem>>, vector<128x128xbf16>
      %cst_17 = arith.constant dense<0.000000e+00> : vector<8x128xf32>
      %23 = tpu.matmul %21, %22, %cst_17 {dimension_numbers = #tpu.dot_dimension_numbers<[1], [0], [0], [1], [0, 0, 1, 1], [], []>} : vector<8x128xbf16>, vector<128x128xbf16>, vector<8x128xf32> -> vector<8x128xf32>
      %c0_18 = arith.constant 0 : index
      %c0_19 = arith.constant 0 : index
      %24 = vector.load %arg6[%c0_18, %c0_19] : memref<1x128xf32, #tpu.memory_space<vmem>>, vector<1x128xf32>
      %25 = vector.broadcast %24 : vector<1x128xf32> to vector<8x128xf32>
      %26 = arith.addf %23, %25 : vector<8x128xf32>
      %27 = tpu.iota {dimensions = array<i32: 0>} : vector<8x128xi32>
      %c2_i32 = arith.constant 2 : i32
      %28 = vector.broadcast %c2_i32 : i32 to vector<8x128xi32>
      %29 = arith.cmpi slt, %27, %28 : vector<8x128xi32>
      %cst_20 = arith.constant 0.000000e+00 : f32
      %cst_21 = arith.constant 1.000000e+00 : f32
      %30 = vector.broadcast %cst_20 : f32 to vector<8x128xf32>
      %31 = vector.broadcast %cst_21 : f32 to vector<8x128xf32>
      %32 = arith.select %29, %30, %31 : vector<8x128xi1>, vector<8x128xf32>
      %c4_i32 = arith.constant 4 : i32
      %33 = vector.broadcast %c4_i32 : i32 to vector<8x128xi32>
      %34 = arith.cmpi slt, %27, %33 : vector<8x128xi32>
      %35 = arith.subf %26, %32 : vector<8x128xf32>
      %cst_22 = arith.constant 0.000000e+00 : f32
      %36 = vector.broadcast %cst_22 : f32 to vector<8x128xf32>
      %37 = arith.select %34, %35, %36 : vector<8x128xi1>, vector<8x128xf32>
      %38 = arith.mulf %37, %37 : vector<8x128xf32>
      %39 = vector.shape_cast %38 : vector<8x128xf32> to vector<1x8x128xf32>
      %cst_23 = arith.constant dense<0.000000e+00> : vector<1xf32>
      %40 = vector.multi_reduction <add>, %39, %cst_23 [1, 2] : vector<1x8x128xf32> to vector<1xf32>
      %41 = vector.shape_cast %40 : vector<1xf32> to vector<1x1x1xf32>
      %42 = vector.extract %41[0, 0, 0] : f32 from vector<1x1x1xf32>
      %cst_24 = arith.constant 5.000000e-01 : f32
      %43 = arith.mulf %cst_24, %42 : f32
      %cst_25 = arith.constant 2.560000e+02 : f32
      %44 = arith.divf %43, %cst_25 : f32
      %c0_26 = arith.constant 0 : index
      %c0_27 = arith.constant 0 : index
      %45 = memref.load %arg1[%c0_26, %c0_27] : memref<1x1xf32, #tpu.memory_space<smem>>
      %46 = arith.mulf %45, %44 : f32
      %c0_28 = arith.constant 0 : index
      %c0_29 = arith.constant 0 : index
      %47 = memref.load %arg7[%c0_28, %c0_29] : memref<1x1xf32, #tpu.memory_space<smem>>
      memref.store %46, %arg7[%c0_28, %c0_29] : memref<1x1xf32, #tpu.memory_space<smem>>
    } else {
    }
    return
  }
  func.func @transform_0(%arg0: i32) -> (i32, i32) {
    %c0_i32 = arith.constant 0 : i32
    %c0_i32_0 = arith.constant 0 : i32
    %c0_i32_1 = arith.constant 0 : i32
    return %c0_i32, %c0_i32_0 : i32, i32
  }
  func.func @transform_1(%arg0: i32) -> (i32, i32) {
    %c0_i32 = arith.constant 0 : i32
    %c0_i32_0 = arith.constant 0 : i32
    return %c0_i32, %arg0 : i32, i32
  }
  func.func @transform_2(%arg0: i32) -> (i32, i32) {
    %c0_i32 = arith.constant 0 : i32
    %c0_i32_0 = arith.constant 0 : i32
    return %arg0, %c0_i32 : i32, i32
  }
  func.func @transform_3(%arg0: i32) -> (i32, i32) {
    %c0_i32 = arith.constant 0 : i32
    %c0_i32_0 = arith.constant 0 : i32
    %c0_i32_1 = arith.constant 0 : i32
    return %c0_i32, %c0_i32_0 : i32, i32
  }
  func.func @transform_4(%arg0: i32) -> (i32, i32) {
    %c0_i32 = arith.constant 0 : i32
    %c0_i32_0 = arith.constant 0 : i32
    %c0_i32_1 = arith.constant 0 : i32
    return %c0_i32, %c0_i32_0 : i32, i32
  }
  func.func @transform_5(%arg0: i32) -> (i32, i32) {
    %c0_i32 = arith.constant 0 : i32
    %c0_i32_0 = arith.constant 0 : i32
    %c0_i32_1 = arith.constant 0 : i32
    return %c0_i32, %c0_i32_0 : i32, i32
  }
  func.func @transform_6(%arg0: i32) -> (i32, i32) {
    %c0_i32 = arith.constant 0 : i32
    %c0_i32_0 = arith.constant 0 : i32
    %c0_i32_1 = arith.constant 0 : i32
    return %c0_i32, %c0_i32_0 : i32, i32
  }
}

</mosaic_0001>

<bundles_post_ra>
// kernel: tpu_custom_call.1
= control target key start
LH: loop header
LB: loop body
LE: loop exit
PB: predicated region body
PF: predicated region fallthrough
CT: control target
= control target key end

     0   :  { %s1585_s0 = inlined_call_operand.<no memory space> [shape: f32[1,1], index: 0, kind: input, shape index: {}]   ;;  %s1586_s1 = inlined_call_operand.hbm [shape: bf16[8,1024], index: 1, kind: input, shape index: {}]   ;;  %s1587_s2 = inlined_call_operand.hbm [shape: bf16[1024,128], index: 2, kind: input, shape index: {}]   ;;  %s1588_s3 = inlined_call_operand.vmem [shape: f32[1,128], index: 3, kind: input, shape index: {}]   ;;  %s1589_s4 = inlined_call_operand.hbm [shape: bf16[128,128], index: 4, kind: input, shape index: {}]   ;;  %s1590_s5 = inlined_call_operand.vmem [shape: f32[1,128], index: 5, kind: input, shape index: {}]   ;;  %s1591_s6 = inlined_call_operand.hbm [shape: f32[1,1], index: 6, kind: output, shape index: {}]  }
   0x1   :  { %11 = sst [smem:[#allocation3]] %s1585_s0 }
   0x2   :  { %12 = vsyncpa [#allocation5], 0 }
   0x3   :  { %14 = vsyncpa [#allocation5 + $0x1], 0 }
   0x4   :  { %15 = vsyncpa [#allocation8], 0 }
   0x5   :  { %17 = vsyncpa [#allocation8 + $0x1], 0 }
   0x6   :  { %18 = vsyncpa [#allocation6], 0  ;;  %s1358_s23 = smov 0   ;;  %s1360_s24 = smov 0  }
   0x7   :  { %s1362_s25 = smov 0   ;;  %s1364_s26 = smov 0  }
   0x8 LB: > { %s1377_s0 = sadd.s32 4294967295, %s1308_s26   ;;  %p65_p0 = scmp.ne.s32.totalorder %s1300_s24, %s1296_s23  ;;  %s1308_s26 = sphi %s1364_s26, %s1605_s26   ;;  %s1304_s25 = sphi %s1362_s25, %s1604_s25   ;;  %s1300_s24 = sphi %s1360_s24, %s1603_s24   ;;  %s1296_s23 = sphi %s1358_s23, %s1602_s23  }
   0x9   : > { %p1592_p1 = scmp.eq.s32.totalorder %s1377_s0, 0  ;;  %p916_p2 = scmp.ge.s32.totalorder %s1308_s26, 1 }
   0xa   : > { %p186_p3 = scmp.lt.s32.totalorder %s1308_s26, 3  ;;  %s1310_s29 = smov [#allocation9]  }
   0xb   : > { %p1386_p5 = por %p1592_p1, %p65_p0  ;;  %s204_s30 = sshll.u32 %s1310_s29, 4  ;;  %s205_s30 = int_to_ptr.vmem [resolvable:$true] %s204_s30 }
   0xc   : > { %p1390_p6 = pnand %p916_p2, %p186_p3  ;;  %s1403_s8 = sadd.s32 1, %s1308_s26  }
   0xd   : > { %s1594_s27 = scalar_select %p1386_p5, 1, 0 }
   0xe   : > { %p1070_p7 = pneg %p1390_p6  ;;  %s52_s9 = sadd.s32 1, %s1304_s25 }
   0xf   : > { %s49_s10 = ssub.s32 %s1308_s26, %s1403_s8  ;;  %s1181_s11 = scalar_lea.vmem %s205_s30, 1024 }
  0x10   : > { %p1398_p8 = pnand %p1070_p7, %p1592_p1  ;;  %p1182_p10 = scmp.ne.s32.totalorder %s205_s30, %s1181_s11 }
  0x11   : > { %p1189_p13 = scmp.lt.s32.totalorder %s205_s30, %s205_s30  ;;  %p1190_p0 = scmp.lt.s32.totalorder %s1181_s11, %s1181_s11 }
  0x12   : > { %p1172_p9 = pneg %p1398_p8 }
  0x13   : > { %p1191_p2 = por %p1190_p0, %p1189_p13 }
  0x14   : > { %p1184_p11 = pnand %p1182_p10, %p1172_p9 }
  0x16   : > { %p1185_p12 = pneg %p1184_p11 }
  0x18   : > { %p1192_p3 = pnand %p1191_p2, %p1185_p12 }
  0x1a   : > { %1195 = shalt.err (!%p1192_p3)
}
  0x1b   : > { %s1311_s12 = smov 64   ;;  %s1312_s13 = smov 4  }
  0x1c   : > { %1073 = dma.hbm_to_vmem [thread:$0]  (!%p1398_p8), %s1589_s4, 1024, %s205_s30, [#allocation8], %s1311_s12, %s1311_s12, %s1312_s13  }
  0x1d   : > { %p50_p7 = scmp.eq.s32.totalorder %s49_s10, 0  ;;  %p59_p9 = scmp.ne.s32.totalorder %s1304_s25, %s1300_s24 }
  0x1e   : > { %p60_p10 = scmp.eq.s32.totalorder %s1308_s26, 0  ;;  %p1082_p11 = scmp.lt.s32.totalorder %s1308_s26, 2 }
  0x1f   : > { %s1423_s16 = scalar_select %p50_p7, %s1304_s25, %s52_s9  }
  0x20   : > { %p61_p12 = por %p60_p10, %p59_p9  ;;  %s1426_s17 = sand.u32 1, %s1304_s25  }
  0x21   : > { %s919_s18 = sshll.u32 %s1426_s17, 4  ;;  %s981_s19 = sshll.u32 %s1308_s26, 8 }
  0x22   : > { %s1433_s22 = scalar_lea.hbm %s1586_s1, %s981_s19  ;;  %s225_s23 = scalar_lea.vmem [#allocation4], %s919_s18 }
  0x23   : > { %s233_s29 = sshll.u32 %s225_s23, 4  ;;  %p1437_p8 = pnand %p1082_p11, %p61_p12  ;;  %s1435_s29 = int_to_ptr.vmem [resolvable:$true] %s233_s29 }
  0x24   : > { %s922_s7 = sshll.u32 %s1426_s17, 8  ;;  %s240_s9 = sand.u32 1, %s1308_s26  }
  0x25   : > { %s222_s10 = scalar_lea.sflag [#allocation5], %s1426_s17  ;;  %s1196_s11 = scalar_lea.hbm %s1433_s22, 256 }
  0x26   : > { %p1197_p13 = scmp.ne.s32.totalorder %s1433_s22, %s1196_s11  ;;  %p1198_p0 = pneg %p1437_p8 }
  0x27   : > { %s1201_s18 = scalar_lea.hbm %s1586_s1, 512  ;;  %p1202_p7 = scmp.lt.s32.totalorder %s1433_s22, %s1586_s1 }
  0x28   : > { %p1199_p2 = pnand %p1198_p0, %p1197_p13  ;;  %p1203_p9 = scmp.lt.s32.totalorder %s1201_s18, %s1196_s11 }
  0x2a   : > { %p1200_p3 = pneg %p1199_p2  ;;  %p1204_p10 = por %p1203_p9, %p1202_p7 }
  0x2c   : > { %p1205_p11 = pnand %p1204_p10, %p1200_p3 }
  0x2e   : > { %1208 = shalt.err (!%p1205_p11)
}
  0x2f   : > { %s1209_s21 = scalar_lea.vmem %s1435_s29, 256  ;;  %s1313_s23 = smov [#allocation4]  }
  0x30   : > { %p1210_p12 = scmp.ne.s32.totalorder %s1435_s29, %s1209_s21  ;;  %s1214_s14 = sshll.u32 %s1313_s23, 4  ;;  %s1215_s14 = int_to_ptr.vmem [resolvable:$false] %s1214_s14 }
  0x31   : > { %s1216_s15 = scalar_lea.vmem %s1215_s14, 512  ;;  %p1217_p4 = scmp.lt.s32.totalorder %s1435_s29, %s1215_s14 }
  0x32   : > { %p1212_p13 = pnand %p1210_p12, %p1198_p0  ;;  %p1218_p1 = scmp.lt.s32.totalorder %s1216_s15, %s1209_s21 }
  0x34   : > { %p1213_p2 = pneg %p1212_p13  ;;  %p1219_p5 = por %p1218_p1, %p1217_p4 }
  0x36   : > { %p1220_p7 = pnand %p1219_p5, %p1213_p2 }
  0x38   : > { %1223 = shalt.err (!%p1220_p7)
}
  0x39   : > { %1077 = dma.hbm_to_vmem [thread:$0]  (!%p1437_p8), %s1433_s22, 256, %s1435_s29, %s222_s10  }
  0x3a   : > { %s244_s11 = scalar_lea.vmem [#allocation7], %s922_s7  ;;  %s982_s19 = sshll.u32 %s1308_s26, 12 }
  0x3b   : > { %s251_s18 = sshll.u32 %s244_s11, 4  ;;  %s1476_s23 = scalar_lea.hbm %s1587_s2, %s982_s19  ;;  %s1470_s18 = int_to_ptr.vmem [resolvable:$true] %s251_s18 }
  0x3c   : > { %s241_s14 = scalar_lea.sflag [#allocation8], %s240_s9  ;;  %s1224_s15 = scalar_lea.hbm %s1476_s23, 4096 }
  0x3d   : > { %p1225_p1 = scmp.ne.s32.totalorder %s1476_s23, %s1224_s15  ;;  %s1229_s29 = scalar_lea.hbm %s1587_s2, 8192 }
  0x3e   : > { %p1230_p3 = scmp.lt.s32.totalorder %s1476_s23, %s1587_s2  ;;  %p1231_p9 = scmp.lt.s32.totalorder %s1229_s29, %s1224_s15 }
  0x3f   : > { %p1227_p4 = pnand %p1225_p1, %p1198_p0 }
  0x40   : > { %p1232_p10 = por %p1231_p9, %p1230_p3 }
  0x41   : > { %p1228_p5 = pneg %p1227_p4 }
  0x43   : > { %p1233_p11 = pnand %p1232_p10, %p1228_p5 }
  0x45   : > { %1236 = shalt.err (!%p1233_p11)
}
  0x46   : > { %s1237_s26 = scalar_lea.vmem %s1470_s18, 4096  ;;  %s1314_s9 = smov [#allocation7]  }
  0x47   : > { %p1238_p12 = scmp.ne.s32.totalorder %s1470_s18, %s1237_s26  ;;  %s1242_s11 = sshll.u32 %s1314_s9, 4  ;;  %s1243_s11 = int_to_ptr.vmem [resolvable:$false] %s1242_s11 }
  0x48   : > { %s1244_s19 = scalar_lea.vmem %s1243_s11, 8192  ;;  %p1245_p7 = scmp.lt.s32.totalorder %s1470_s18, %s1243_s11 }
  0x49   : > { %p1240_p13 = pnand %p1238_p12, %p1198_p0  ;;  %p1246_p1 = scmp.lt.s32.totalorder %s1244_s19, %s1237_s26 }
  0x4b   : > { %p1241_p2 = pneg %p1240_p13  ;;  %p1247_p4 = por %p1246_p1, %p1245_p7 }
  0x4d   : > { %p1248_p3 = pnand %p1247_p4, %p1241_p2 }
  0x4f   : > { %1251 = shalt.err (!%p1248_p3)
}
  0x50   : > { %1080 = dma.hbm_to_vmem [thread:$0]  (!%p1437_p8), %s1476_s23, 4096, %s1470_s18, %s241_s14, %s1311_s12, %s1311_s12, %s1312_s13  }
  0x51   : > { %263 = sbr.rel (%p1390_p6) target bundleno = 785 (0x311), region = 44  ;;  %s265_s20 = sand.u32 (!%p1390_p6), 1, %s1300_s24  }
  0x52   : > { %s926_s21 = sshll.u32 (!%p1390_p6), %s265_s20, 4  ;;  %s266_s15 = scalar_lea.sflag (!%p1390_p6), [#allocation5], %s265_s20 }
  0x53   : > { %s1508_s17 = scalar_lea.vmem (!%p1390_p6), [#allocation4], %s926_s21  ;;  %p1598_p0 = scmp.ne.s32.totalorder (!%p1390_p6), %s1594_s27, 0 }
  0x56   : > { %1279 = dma.done.wait (%p1598_p0), %s266_s15, 256  }
  0x57   : > { %1281 = vsyncadd (%p1598_p0), %s266_s15, 4294967040  ;;  %s274_s30 = sand.u32 1, %s1377_s0   ;;  %s927_s22 = sshll.u32 %s265_s20, 8 }
  0x58   : > { %s275_s12 = scalar_lea.sflag [#allocation8], %s274_s30  ;;  %s1515_s13 = scalar_lea.vmem [#allocation7], %s927_s22 }
  0x59   : > { %1283 = dma.done.wait (%p1598_p0), %s275_s12, 4096  }
  0x5a   : > { %1285 = vsyncadd (%p1598_p0), %s275_s12, 4294963200  ;;  %p1599_p6 = scmp.eq.s32.totalorder %s1377_s0, 0 }
  0x5c   : > { %1287 = dma.done.wait (%p1599_p6), [#allocation8], 1024   ;;  %p1600_p8 = pmov %p1599_p6 }
  0x5d   : > { %p1601_p5 = scmp.ne.s32.totalorder %s1377_s0, 0 }
  0x5e   : > { %1289 = vsyncadd (%p1600_p8), [#allocation8], 4294966272 }
  0x5f   : > { %317 = sbr.rel (%p1601_p5) target bundleno = 102 (0x66), region = 60 }
  0x64   : > { %v1315_v0 = vmov 0.0  }
  0x65   : > { %318 = vst [vmem:[#allocation2] sm:$0xff] %v1315_v0 }
  0x66 PF: > { %v1126_v1 = vld [vmem:[%s1515_s13 + $0x78] sm:$0xff]   ;;  %v1130_v5 = vld [vmem:[%s1515_s13 + $0x70] sm:$0xff]   ;;  %v1134_v9 = vld [vmem:[%s1515_s13 + $0x68] sm:$0xff]   ;;  %p966_p9 = scmp.ne.s32.totalorder %s1377_s0, 1 }
  0x67   : > { %v1127_v2 = vld [vmem:[%s1515_s13 + $0xf8] sm:$0xff]   ;;  %983 = vmatprep.subr.bf16.mxu0 %v1126_v1  ;;  %v1131_v6 = vld [vmem:[%s1515_s13 + $0xf0] sm:$0xff]   ;;  %v1135_v10 = vld [vmem:[%s1515_s13 + $0xe8] sm:$0xff]   ;;  %s823_s14 = sld [smem:[#allocation3]] (!%p966_p9) }
  0x68   : > { %v1128_v3 = vld [vmem:[%s1515_s13 + $0x38] sm:$0xff]   ;;  %1005 = vmatprep.subr.bf16.mxu1 %v1127_v2  ;;  %v1132_v7 = vld [vmem:[%s1515_s13 + $0x30] sm:$0xff]   ;;  %v1136_v11 = vld [vmem:[%s1515_s13 + $0x28] sm:$0xff]  }
  0x69   : > { %v1129_v4 = vld [vmem:[%s1515_s13 + $0xb8] sm:$0xff]   ;;  %984 = vmatpush3.bf16.msra.mxu0 %v1128_v3  ;;  %v1133_v8 = vld [vmem:[%s1515_s13 + $0xb0] sm:$0xff]   ;;  %v1137_v12 = vld [vmem:[%s1515_s13 + $0xa8] sm:$0xff]  }
  0x6a   : > { %1006 = vmatpush3.bf16.msra.mxu1 %v1129_v4  ;;  %985 = vmatprep.subr.bf16.mxu0 %v1130_v5  ;;  %v1138_v13 = vld [vmem:[%s1515_s13 + $0x60] sm:$0xff]   ;;  %v1142_v17 = vld [vmem:[%s1515_s13 + $0x58] sm:$0xff]   ;;  %v1146_v21 = vld [vmem:[%s1515_s13 + $0x50] sm:$0xff]  }
  0x6b   : > { %1007 = vmatprep.subr.bf16.mxu1 %v1131_v6  ;;  %v1139_v14 = vld [vmem:[%s1515_s13 + $0xe0] sm:$0xff]   ;;  %v1143_v18 = vld [vmem:[%s1515_s13 + $0xd8] sm:$0xff]   ;;  %v1147_v22 = vld [vmem:[%s1515_s13 + $0xd0] sm:$0xff]  }
  0x6c   : > { %v1140_v15 = vld [vmem:[%s1515_s13 + $0x20] sm:$0xff]   ;;  %v1144_v19 = vld [vmem:[%s1515_s13 + $0x18] sm:$0xff]   ;;  %v1148_v23 = vld [vmem:[%s1515_s13 + $0x10] sm:$0xff]  }
  0x6d   : > { %986 = vmatpush3.bf16.msra.mxu0 %v1132_v7  ;;  %v1141_v16 = vld [vmem:[%s1515_s13 + $0xa0] sm:$0xff]   ;;  %v1145_v20 = vld [vmem:[%s1515_s13 + $0x98] sm:$0xff]   ;;  %v1149_v24 = vld [vmem:[%s1515_s13 + $0x90] sm:$0xff]  }
  0x6e   : > { %1008 = vmatpush3.bf16.msra.mxu1 %v1133_v8  ;;  %987 = vmatprep.subr.bf16.mxu0 %v1134_v9  ;;  %v1150_v25 = vld [vmem:[%s1515_s13 + $0x48] sm:$0xff]   ;;  %v1154_v29 = vld [vmem:[%s1515_s13 + $0x40] sm:$0xff]   ;;  %v319_v45 = vld [vmem:[#allocation2] sm:$0xff] }
  0x6f   : > { %1009 = vmatprep.subr.bf16.mxu1 %v1135_v10  ;;  %v1151_v26 = vld [vmem:[%s1515_s13 + $0xc8] sm:$0xff]   ;;  %v1155_v30 = vld [vmem:[%s1515_s13 + $0xc0] sm:$0xff]  }
  0x70   : > { %v1152_v27 = vld [vmem:[%s1515_s13 + $0x8] sm:$0xff]   ;;  %v1156_v31 = vld [vmem:[%s1515_s13] sm:$0xff]  }
  0x71   : > { %988 = vmatpush3.bf16.msra.mxu0 %v1136_v11  ;;  %v1153_v28 = vld [vmem:[%s1515_s13 + $0x88] sm:$0xff]   ;;  %v1157_v32 = vld [vmem:[%s1515_s13 + $0x80] sm:$0xff]  }
  0x72   : > { %1010 = vmatpush3.bf16.msra.mxu1 %v1137_v12  ;;  %989 = vmatprep.subr.bf16.mxu0 %v1138_v13  ;;  %v320_v33 = vld [vmem:[%s1508_s17] sm:$0xff]  ;;  %v321_v34 = vld [vmem:[%s1508_s17 + $0x8] sm:$0xff] }
  0x73   : > { %1011 = vmatprep.subr.bf16.mxu1 %v1139_v14  ;;  %v930_v35 = vcombine.low %v320_v33, %v320_v33  ;;  %v931_v36 = vcombine.high %v320_v33, %v320_v33  ;;  %v932_v37 = vcombine.low %v321_v34, %v321_v34  ;;  %v933_v38 = vcombine.high %v321_v34, %v321_v34 }
  0x75   : > { %990 = vmatpush3.bf16.msra.mxu0 %v1140_v15  ;;  %624 = vmatprep.mubr.bf16.mxu0 %v931_v36 }
  0x76   : > { %1012 = vmatpush3.bf16.msra.mxu1 %v1141_v16  ;;  %991 = vmatprep.subr.bf16.mxu0 %v1142_v17 }
  0x77   : > { %1013 = vmatprep.subr.bf16.mxu1 %v1143_v18  ;;  %664 = vmatprep.mubr.bf16.mxu1 %v933_v38 }
  0x79   : > { %992 = vmatpush3.bf16.msra.mxu0 %v1144_v19 }
  0x7a   : > { %1014 = vmatpush3.bf16.msra.mxu1 %v1145_v20  ;;  %993 = vmatprep.subr.bf16.mxu0 %v1146_v21 }
  0x7b   : > { %1015 = vmatprep.subr.bf16.mxu1 %v1147_v22 }
  0x7d   : > { %994 = vmatpush3.bf16.msra.mxu0 %v1148_v23 }
  0x7e   : > { %1016 = vmatpush3.bf16.msra.mxu1 %v1149_v24  ;;  %995 = vmatprep.subr.bf16.mxu0 %v1150_v25 }
  0x7f   : > { %1017 = vmatprep.subr.bf16.mxu1 %v1151_v26 }
  0x81   : > { %996 = vmatpush3.bf16.msra.mxu0 %v1152_v27 }
  0x82   : > { %1018 = vmatpush3.bf16.msra.mxu1 %v1153_v28  ;;  %997 = vmatprep.subr.bf16.mxu0 %v1154_v29 }
  0x83   : > { %1019 = vmatprep.subr.bf16.mxu1 %v1155_v30 }
  0x85   : > { %998 = vmatpush3.bf16.msra.mxu0 %v1156_v31 }
  0x86   : > { %1020 = vmatpush3.bf16.msra.mxu1 %v1157_v32 }
  0x88   : > { %625 = vmatmul.mubr.bf16.vlgmr.msra.gmra.mxu0 %v930_v35 }
  0x89   : > { %665 = vmatmul.mubr.bf16.vlgmr.msra.gmra.mxu1 %v932_v37 }
 0x148   : > { %v999_v39 = vpop.f32.mrf.mxu0 }
 0x149   : > { %v1021_v40 = vpop.f32.mrf.mxu1 }
 0x14a   : > { %v1000_v41 = vpop.f32.mrf.mxu0 }
 0x14b   : > { %v1022_v42 = vpop.f32.mrf.mxu1  ;;  %v1001_v43 = vadd.f32 %v1000_v41, %v999_v39 }
 0x14c   : > { %v1023_v44 = vadd.f32 %v1022_v42, %v1021_v40  ;;  %v1002_v46 = vpop.f32.mrf.mxu0 }
 0x14d   : > { %v1024_v47 = vpop.f32.mrf.mxu1 }
 0x14e   : > { %v667_v48 = vadd.f32 %v1023_v44, %v1001_v43  ;;  %v1003_v49 = vpop.f32.mrf.mxu0  ;;  %677 = sbr.rel (%p966_p9) target bundleno = 779 (0x30b), region = 64 }
 0x14f   : > { %v1025_v50 = vpop.f32.mrf.mxu1 }
 0x150   : > { %v672_v51 = vadd.f32 %v667_v48, %v319_v45 }
 0x152   : > { %673 = vst [vmem:[#allocation2] sm:$0xff] %v672_v51 }
 0x153   : > { %v1162_v52 = vld [vmem:[#allocation9 + $0x38] sm:$0xff]   ;;  %v1316_v53 = vmov 0.0   ;;  %v1163_v54 = vld [vmem:[#allocation9 + $0x30] sm:$0xff]   ;;  %vm1317_vm0 = vmmov 0   ;;  %v1164_v55 = vld [vmem:[#allocation9 + $0x28] sm:$0xff]   ;;  %v802_v3 = vlaneseq  ;;  %v1318_v7 = vmov 1.0  }
 0x154   : > { %1036 = vmatprep.subr.bf16.mxu0 %v1316_v53  ;;  %1052 = vmatprep.mubr.msk.bf16.mxu0 %vm1317_vm0, %v1316_v53  ;;  %v1165_v56 = vld [vmem:[#allocation9 + $0x20] sm:$0xff]   ;;  %v1166_v57 = vld [vmem:[#allocation9 + $0x18] sm:$0xff]   ;;  %v1167_v60 = vld [vmem:[#allocation9 + $0x10] sm:$0xff]  }
 0x155   : > { %1037 = vmatpush3.bf16.msra.mxu0 %v1162_v52  ;;  %v967_v59 = vld [vmem:[%s1588_s3] ss:$0 sm:$0xff]  ;;  %v1168_v62 = vld [vmem:[#allocation9 + $0x8] sm:$0xff]   ;;  %v1169_v0 = vld [vmem:[#allocation9] sm:$0xff]   ;;  %v803_v4 = vshrl.u32 %v802_v3, 7 }
 0x156   : > { %1038 = vmatprep.subr.bf16.mxu0 %v1316_v53  ;;  %v968_v5 = vld [vmem:[%s1590_s5] ss:$0 sm:$0xff] }
 0x157   : > { %vm804_vm2 = vcmp.lt.s32.totalorder %v803_v4, 2  ;;  %vm806_vm3 = vcmp.lt.s32.totalorder %v803_v4, 4 }
 0x158   : > { %v805_v8 = vsel %vm804_vm2, 0.0, %v1318_v7 }
 0x159   : > { %1039 = vmatpush3.bf16.msra.mxu0 %v1163_v54  ;;  %v678_v58 = vld [vmem:[#allocation2] sm:$0xff] }
 0x15a   : > { %1040 = vmatprep.subr.bf16.mxu0 %v1316_v53  ;;  %v686_v61 = vadd.f32 %v967_v59, %v678_v58 }
 0x15c   : > { %v688_v63 = vmul.f32 0.2, %v686_v61  ;;  %vm687_vm1 = vcmp.gt.f32.partialorder %v686_v61, 0.0 }
 0x15d   : > { %1041 = vmatpush3.bf16.msra.mxu0 %v1164_v55 }
 0x15e   : > { %1042 = vmatprep.subr.bf16.mxu0 %v1316_v53  ;;  %v689_v1 = vsel %vm687_vm1, %v686_v61, %v688_v63 }
 0x15f   : > { %v690_v2 = vpack.c.bf16 %v689_v1, %v689_v1 }
 0x161   : > { %1043 = vmatpush3.bf16.msra.mxu0 %v1165_v56 }
 0x162   : > { %1044 = vmatprep.subr.bf16.mxu0 %v1316_v53 }
 0x165   : > { %1045 = vmatpush3.bf16.msra.mxu0 %v1166_v57 }
 0x166   : > { %1046 = vmatprep.subr.bf16.mxu0 %v1316_v53 }
 0x169   : > { %1047 = vmatpush3.bf16.msra.mxu0 %v1167_v60 }
 0x16a   : > { %1048 = vmatprep.subr.bf16.mxu0 %v1316_v53 }
 0x16d   : > { %1049 = vmatpush3.bf16.msra.mxu0 %v1168_v62 }
 0x16e   : > { %1050 = vmatprep.subr.bf16.mxu0 %v1316_v53 }
 0x171   : > { %1051 = vmatpush3.bf16.msra.mxu0 %v1169_v0 }
 0x174   : > { %1053 = vmatmul.mubr.bf16.vlgmr.msra.gmra.mxu0 %v690_v2 }
 0x234   : > { %v796_v6 = vpop.f32.mrf.mxu0 }
 0x235   : > { %v797_v9 = vadd.f32 %v968_v5, %v796_v6 }
 0x236   : > { %v1054_v10 = vpop.f32.mrf.mxu0 }
 0x237   : > { %v807_v11 = vsub.f32 %v797_v9, %v805_v8 }
 0x238   : > { %v799_v12 = vpop.f32.mrf.mxu0 }
 0x239   : > { %v808_v13 = vsel %vm806_vm3, %v807_v11, 0.0 }
 0x23a   : > { %v1055_v14 = vpop.f32.mrf.mxu0  ;;  %v809_v15 = vmul.f32 %v808_v13, %v808_v13 }
 0x23c   : > { %810 = vadd.xlane.f32.xlu0 %v809_v15 }
 0x2c5   : > { %v811_v16 = vpop.xlane.xlu0 %810 }
 0x2c6   : > { %v812_v17 = vrot.slane %v811_v16, 4 }
 0x2c8   : > { %v813_v18 = vadd.f32 %v812_v17, %v811_v16 }
 0x2ca   : > { %v814_v19 = vrot.slane %v813_v18, 2 }
 0x2cc   : > { %v815_v20 = vadd.f32 %v814_v19, %v813_v18 }
 0x2ce   : > { %v816_v21 = vrot.slane %v815_v20, 1 }
 0x2d0   : > { %v817_v22 = vadd.f32 %v816_v21, %v815_v20 }
 0x2d2   : > { %1056 = vpush %v817_v22 }
 0x303   : > { %s1057_s29 = spop %1056 }
 0x304   : > { %s819_s7 = smul.f32 0.5, %s1057_s29 }
 0x306   : > { %s822_s10 = smul.f32 0.00390625, %s819_s7 }
 0x308   : > { %s824_s26 = smul.f32 %s823_s14, %s822_s10 }
 0x30a   : > { %826 = sst [smem:[#allocation10]] %s824_s26 }
 0x30b PF: > { %p1084_p10 = scmp.eq.s32.totalorder %s1377_s0, 1  ;;  %s1319_s9 = smov [#allocation10]  }
 0x30d   : > { %1067 = dma.smem_to_hbm (%p1084_p10), %s1319_s9, 16, %s1591_s6, [#allocation6]  }
 0x30e   : > { %1291 = dma.done.wait (%p1084_p10), [#allocation6], 16  }
 0x30f   : > { %1293 = vsyncadd (%p1084_p10), [#allocation6], 4294967280 }
 0x310   : > { %840 = sfence }
 0x311 PF: > { %p21_p11 = scmp.ge.s32.totalorder %s1403_s8, 4   ;;  %s1602_s23 = smov %s1300_s24 }
 0x312   : > { %s1603_s24 = smov %s1304_s25  ;;  %s1604_s25 = smov %s1423_s16 }
 0x313   : > { %s1605_s26 = smov %s1403_s8  ;;  %23 = sbr.rel (!%p21_p11) target bundleno = 8 (0x8), region = 107 }
 0x318   :  { %846 = vsyncpa [#allocation5], 1 }
 0x319   :  { %848 = vsyncpa [#allocation5 + $0x1], 1 }
 0x31a   :  { %849 = vsyncpa [#allocation8], 1 }
 0x31b   :  { %851 = vsyncpa [#allocation8 + $0x1], 1 }
 0x31c   :  { %852 = vsyncpa [#allocation6], 1 }
 0x31d   :  { %854 = vsyncpa [#allocation6 + $0x1], 1 }

</bundles_post_ra>
